<compile_context>
chip_gen: v7x
topology: tpu7x:2x2x1
jax: 0.10.0
libtpu: 0.0.40
codegen_flags: <defaults>
</compile_context>

<pallas_src>
import jax
import jax.numpy as jnp
from jax.experimental import pallas as pl
from jax.experimental.pallas import tpu as pltpu


def _round_up(x, m):
    return (x + m - 1) // m * m


def conv3x3_bn_relu_kernel(xa_ref, xb_ref, w_ref, scale_ref, bias_ref, o_ref):
    # xa_ref:    (1, TH, Wp+2, Cin)  body rows of the zero-padded input tile
    # xb_ref:    (1, 2,  Wp+2, Cin)  2-row bottom halo (next rows of same image)
    # w_ref:     (9*Cin, Cout_p)     taps (kh, kw, cin) flattened into K
    # scale_ref: (1, Cout_p)         folded BN scale = gamma / sqrt(var + eps)
    # bias_ref:  (1, Cout_p)         folded BN bias  = beta - mean * scale
    # o_ref:     (1, TH, Wp, Cout_p)
    TH = o_ref.shape[1]
    Wp = o_ref.shape[2]
    Cp = o_ref.shape[3]
    Cin = xa_ref.shape[3]

    def tap(kh, kw):
        # rows [kh, kh+TH) of the (TH+2)-row logical window, cols [kw, kw+Wp).
        top = xa_ref[0, kh:, kw:kw + Wp, :]                 # (TH - kh, Wp, Cin)
        if kh == 0:
            return top
        bot = xb_ref[0, :kh, kw:kw + Wp, :]                 # (kh, Wp, Cin)
        return jnp.concatenate([top, bot], axis=0)          # (TH, Wp, Cin)

    # In-VMEM im2col: taps ordered (kh major, kw, cin minor) to match w_ref.
    patch = jnp.concatenate(
        [tap(kh, kw) for kh in range(3) for kw in range(3)],
        axis=-1)                                            # (TH, Wp, 9*Cin)

    # One deep-K MXU matmul: (TH*Wp, 9*Cin) x (9*Cin, Cout_p), f32 accumulate.
    acc = jnp.dot(patch.reshape(TH * Wp, 9 * Cin), w_ref[...],
                  preferred_element_type=jnp.float32)       # (TH*Wp, Cout_p)

    # Fused eval-mode BatchNorm + ReLU epilogue.
    y = jnp.maximum(acc * scale_ref[...] + bias_ref[...], 0.0)
    o_ref[...] = y.reshape(1, TH, Wp, Cp).astype(o_ref.dtype)


def conv3x3_bn_relu(x_nchw, weight_oihw, gamma, beta, run_mean, run_var,
                    eps=1e-5, tile_h=None):
    """Forward of the Conv3x3 module. x_nchw: (N, Cin, H, W) -> (N, Cout, H, W)."""
    N, Cin, H, W = x_nchw.shape
    Cout = weight_oihw.shape[0]

    Cout_p = _round_up(Cout, 128)       # lane-dense output / full MXU N dim
    Wp = _round_up(W, 8)                # keeps in-kernel reshapes layout-clean

    if tile_h is None:
        # Keep the per-step working set to a few MiB so it double-buffers on
        # every generation (v7x has only 64 MiB VMEM / 32 MiB scoped default).
        bytes_per_row = 4 * (2 * (Wp + 2) * Cin      # dbl-buffered input rows
                             + 2 * Wp * Cout_p       # dbl-buffered output rows
                             + 9 * Wp * Cin          # im2col patch
                             + 2 * Wp * Cout_p)      # f32 acc + epilogue temp
        tile_h = ((12 << 20) // bytes_per_row) // 8 * 8
        tile_h = max(8, min(tile_h, _round_up(H, 8)))
    TH = tile_h
    assert TH % 8 == 0 and TH >= 8, "tile_h must be a positive multiple of 8"

    Ht = _round_up(H, TH)               # junk rows >= H are sliced off at the end
    n_th = Ht // TH

    # --- glue (plain JAX): layout change, padding, BN folding ---------------
    x_nhwc = jnp.transpose(x_nchw, (0, 2, 3, 1))                     # (N,H,W,Cin)
    x_pad = jnp.pad(
        x_nhwc, ((0, 0), (1, 1 + (Ht - H)), (1, 1 + (Wp - W)), (0, 0)))
    # x_pad: (N, Ht+2, Wp+2, Cin); rows/cols beyond the conv halo are zero.

    # (Cout, Cin, 3, 3) -> (kh, kw, Cin, Cout) -> (9*Cin, Cout) -> pad to Cout_p
    w2d = jnp.transpose(weight_oihw, (2, 3, 1, 0)).reshape(9 * Cin, Cout)
    w2d = jnp.pad(w2d, ((0, 0), (0, Cout_p - Cout))).astype(x_nchw.dtype)

    scale = (gamma / jnp.sqrt(run_var + eps)).astype(jnp.float32)    # (Cout,)
    bias = (beta.astype(jnp.float32) - run_mean * scale)             # (Cout,)
    scale = jnp.pad(scale, (0, Cout_p - Cout)).reshape(1, Cout_p)
    bias = jnp.pad(bias, (0, Cout_p - Cout)).reshape(1, Cout_p)

    # --- hot path: fused conv+bn+relu, grid over (batch, H tiles) -----------
    out_full = pl.pallas_call(
        conv3x3_bn_relu_kernel,
        out_shape=jax.ShapeDtypeStruct((N, Ht, Wp, Cout_p), x_nchw.dtype),
        grid_spec=pltpu.PrefetchScalarGridSpec(
            num_scalar_prefetch=0,
            grid=(N, n_th),
            in_specs=[
                # body: padded rows [h*TH, h*TH + TH)
                pl.BlockSpec((1, TH, Wp + 2, Cin),
                             lambda n, h: (n, h, 0, 0)),
                # halo: padded rows [h*TH + TH, h*TH + TH + 2) of the same array
                pl.BlockSpec((1, 2, Wp + 2, Cin),
                             lambda n, h: (n, (h + 1) * (TH // 2), 0, 0)),
                pl.BlockSpec((9 * Cin, Cout_p), lambda n, h: (0, 0)),
                pl.BlockSpec((1, Cout_p), lambda n, h: (0, 0)),
                pl.BlockSpec((1, Cout_p), lambda n, h: (0, 0)),
            ],
            out_specs=pl.BlockSpec((1, TH, Wp, Cout_p),
                                   lambda n, h: (n, h, 0, 0)),
        ),
        compiler_params=pltpu.CompilerParams(
            dimension_semantics=("parallel", "parallel")),
    )(x_pad, x_pad, w2d, scale, bias)

    out = out_full[:, :H, :W, :Cout]                  # drop channel/row/col pad
    return jnp.transpose(out, (0, 3, 1, 2))           # back to NCHW


def _reference(x_nchw, weight_oihw, gamma, beta, run_mean, run_var, eps=1e-5):
    y = jax.lax.conv_general_dilated(
        x_nchw, weight_oihw, window_strides=(1, 1), padding=((1, 1), (1, 1)),
        dimension_numbers=("NCHW", "OIHW", "NCHW"))
    scale = (gamma / jnp.sqrt(run_var + eps)).reshape(1, -1, 1, 1)
    bias = (beta - run_mean * gamma / jnp.sqrt(run_var + eps)).reshape(1, -1, 1, 1)
    return jnp.maximum(y * scale + bias, 0.0)


if __name__ == "__main__":
    key = jax.random.PRNGKey(0)
    N, Cin, H, W = 2, 4, 16, 16
    Cout = 8

    k1, k2, k3, k4, k5, k6 = jax.random.split(key, 6)
    x = jax.random.normal(k1, (N, Cin, H, W), dtype=jnp.float32)
    weight = jax.random.normal(k2, (Cout, Cin, 3, 3), dtype=jnp.float32) * 0.1
    gamma = 1.0 + 0.1 * jax.random.normal(k3, (Cout,), dtype=jnp.float32)
    beta = 0.1 * jax.random.normal(k4, (Cout,), dtype=jnp.float32)
    run_mean = 0.1 * jax.random.normal(k5, (Cout,), dtype=jnp.float32)
    run_var = jnp.abs(jax.random.normal(k6, (Cout,), dtype=jnp.float32)) + 0.5

    ref = _reference(x, weight, gamma, beta, run_mean, run_var)

    # Multi-tile path: 2 H-tiles per image -> exercises the halo BlockSpec.
    out = conv3x3_bn_relu(x, weight, gamma, beta, run_mean, run_var, tile_h=8)
    out = jax.block_until_ready(out)
    assert out.shape == (N, Cout, H, W)
    assert jnp.allclose(out, ref, atol=1e-4, rtol=1e-4), "mismatch (tile_h=8)"

    # Auto tile size: single H-tile at these shapes.
    out2 = conv3x3_bn_relu(x, weight, gamma, beta, run_mean, run_var)
    out2 = jax.block_until_ready(out2)
    assert jnp.allclose(out2, ref, atol=1e-4, rtol=1e-4), "mismatch (auto tile)"

    print("KERNEL_OK")
</pallas_src>

<mosaic_0001>
module attributes {stable_mosaic.version = 11 : i64} {
  func.func @conv3x3_bn_relu_kernel(%arg0: i32, %arg1: i32, %arg2: memref<1x8x18x4xf32, #tpu.memory_space<vmem>>, %arg3: memref<1x2x18x4xf32, #tpu.memory_space<vmem>>, %arg4: memref<36x128xf32, #tpu.memory_space<vmem>>, %arg5: memref<1x128xf32, #tpu.memory_space<vmem>>, %arg6: memref<1x128xf32, #tpu.memory_space<vmem>>, %arg7: memref<1x8x16x128xf32, #tpu.memory_space<vmem>>) attributes {dimension_semantics = [#tpu.dimension_semantics<parallel>, #tpu.dimension_semantics<parallel>], iteration_bounds = array<i64: 2, 2>, scalar_prefetch = 0 : i64, scratch_operands = 0 : i64, tpu.core_type = #tpu.core_type<tc>, window_params = [{transform_indices = @transform_0, window_bounds = array<i64: 1, 8, 18, 4>}, {transform_indices = @transform_1, window_bounds = array<i64: 1, 2, 18, 4>}, {pipeline_mode = #tpu.pipeline_mode<synchronous>, transform_indices = @transform_2, window_bounds = array<i64: 36, 128>}, {pipeline_mode = #tpu.pipeline_mode<synchronous>, transform_indices = @transform_3, window_bounds = array<i64: 1, 128>}, {pipeline_mode = #tpu.pipeline_mode<synchronous>, transform_indices = @transform_4, window_bounds = array<i64: 1, 128>}, {transform_indices = @transform_5, window_bounds = array<i64: 1, 8, 16, 128>}]} {
    %c0 = arith.constant 0 : index
    %c0_0 = arith.constant 0 : index
    %c0_1 = arith.constant 0 : index
    %c0_2 = arith.constant 0 : index
    %0 = vector.load %arg2[%c0, %c0_0, %c0_1, %c0_2] : memref<1x8x18x4xf32, #tpu.memory_space<vmem>>, vector<1x8x16x4xf32>
    %1 = vector.shape_cast %0 : vector<1x8x16x4xf32> to vector<8x16x4xf32>
    %c0_3 = arith.constant 0 : index
    %c0_4 = arith.constant 0 : index
    %c1 = arith.constant 1 : index
    %c0_5 = arith.constant 0 : index
    %2 = vector.load %arg2[%c0_3, %c0_4, %c1, %c0_5] : memref<1x8x18x4xf32, #tpu.memory_space<vmem>>, vector<1x8x16x4xf32>
    %3 = vector.shape_cast %2 : vector<1x8x16x4xf32> to vector<8x16x4xf32>
    %c0_6 = arith.constant 0 : index
    %c0_7 = arith.constant 0 : index
    %c2 = arith.constant 2 : index
    %c0_8 = arith.constant 0 : index
    %4 = vector.load %arg2[%c0_6, %c0_7, %c2, %c0_8] : memref<1x8x18x4xf32, #tpu.memory_space<vmem>>, vector<1x8x16x4xf32>
    %5 = vector.shape_cast %4 : vector<1x8x16x4xf32> to vector<8x16x4xf32>
    %c0_9 = arith.constant 0 : index
    %c1_10 = arith.constant 1 : index
    %c0_11 = arith.constant 0 : index
    %c0_12 = arith.constant 0 : index
    %6 = vector.load %arg2[%c0_9, %c1_10, %c0_11, %c0_12] : memref<1x8x18x4xf32, #tpu.memory_space<vmem>>, vector<1x7x16x4xf32>
    %7 = vector.shape_cast %6 : vector<1x7x16x4xf32> to vector<7x16x4xf32>
    %c0_13 = arith.constant 0 : index
    %c0_14 = arith.constant 0 : index
    %c0_15 = arith.constant 0 : index
    %c0_16 = arith.constant 0 : index
    %8 = vector.load %arg3[%c0_13, %c0_14, %c0_15, %c0_16] : memref<1x2x18x4xf32, #tpu.memory_space<vmem>>, vector<1x1x16x4xf32>
    %9 = vector.shape_cast %8 : vector<1x1x16x4xf32> to vector<1x16x4xf32>
    %10 = tpu.concatenate %7, %9 in 0 : vector<7x16x4xf32>, vector<1x16x4xf32> -> vector<8x16x4xf32>
    %c0_17 = arith.constant 0 : index
    %c1_18 = arith.constant 1 : index
    %c1_19 = arith.constant 1 : index
    %c0_20 = arith.constant 0 : index
    %11 = vector.load %arg2[%c0_17, %c1_18, %c1_19, %c0_20] : memref<1x8x18x4xf32, #tpu.memory_space<vmem>>, vector<1x7x16x4xf32>
    %12 = vector.shape_cast %11 : vector<1x7x16x4xf32> to vector<7x16x4xf32>
    %c0_21 = arith.constant 0 : index
    %c0_22 = arith.constant 0 : index
    %c1_23 = arith.constant 1 : index
    %c0_24 = arith.constant 0 : index
    %13 = vector.load %arg3[%c0_21, %c0_22, %c1_23, %c0_24] : memref<1x2x18x4xf32, #tpu.memory_space<vmem>>, vector<1x1x16x4xf32>
    %14 = vector.shape_cast %13 : vector<1x1x16x4xf32> to vector<1x16x4xf32>
    %15 = tpu.concatenate %12, %14 in 0 : vector<7x16x4xf32>, vector<1x16x4xf32> -> vector<8x16x4xf32>
    %c0_25 = arith.constant 0 : index
    %c1_26 = arith.constant 1 : index
    %c2_27 = arith.constant 2 : index
    %c0_28 = arith.constant 0 : index
    %16 = vector.load %arg2[%c0_25, %c1_26, %c2_27, %c0_28] : memref<1x8x18x4xf32, #tpu.memory_space<vmem>>, vector<1x7x16x4xf32>
    %17 = vector.shape_cast %16 : vector<1x7x16x4xf32> to vector<7x16x4xf32>
    %c0_29 = arith.constant 0 : index
    %c0_30 = arith.constant 0 : index
    %c2_31 = arith.constant 2 : index
    %c0_32 = arith.constant 0 : index
    %18 = vector.load %arg3[%c0_29, %c0_30, %c2_31, %c0_32] : memref<1x2x18x4xf32, #tpu.memory_space<vmem>>, vector<1x1x16x4xf32>
    %19 = vector.shape_cast %18 : vector<1x1x16x4xf32> to vector<1x16x4xf32>
    %20 = tpu.concatenate %17, %19 in 0 : vector<7x16x4xf32>, vector<1x16x4xf32> -> vector<8x16x4xf32>
    %c0_33 = arith.constant 0 : index
    %c2_34 = arith.constant 2 : index
    %c0_35 = arith.constant 0 : index
    %c0_36 = arith.constant 0 : index
    %21 = vector.load %arg2[%c0_33, %c2_34, %c0_35, %c0_36] : memref<1x8x18x4xf32, #tpu.memory_space<vmem>>, vector<1x6x16x4xf32>
    %22 = vector.shape_cast %21 : vector<1x6x16x4xf32> to vector<6x16x4xf32>
    %c0_37 = arith.constant 0 : index
    %c0_38 = arith.constant 0 : index
    %c0_39 = arith.constant 0 : index
    %c0_40 = arith.constant 0 : index
    %23 = vector.load %arg3[%c0_37, %c0_38, %c0_39, %c0_40] : memref<1x2x18x4xf32, #tpu.memory_space<vmem>>, vector<1x2x16x4xf32>
    %24 = vector.shape_cast %23 : vector<1x2x16x4xf32> to vector<2x16x4xf32>
    %25 = tpu.concatenate %22, %24 in 0 : vector<6x16x4xf32>, vector<2x16x4xf32> -> vector<8x16x4xf32>
    %c0_41 = arith.constant 0 : index
    %c2_42 = arith.constant 2 : index
    %c1_43 = arith.constant 1 : index
    %c0_44 = arith.constant 0 : index
    %26 = vector.load %arg2[%c0_41, %c2_42, %c1_43, %c0_44] : memref<1x8x18x4xf32, #tpu.memory_space<vmem>>, vector<1x6x16x4xf32>
    %27 = vector.shape_cast %26 : vector<1x6x16x4xf32> to vector<6x16x4xf32>
    %c0_45 = arith.constant 0 : index
    %c0_46 = arith.constant 0 : index
    %c1_47 = arith.constant 1 : index
    %c0_48 = arith.constant 0 : index
    %28 = vector.load %arg3[%c0_45, %c0_46, %c1_47, %c0_48] : memref<1x2x18x4xf32, #tpu.memory_space<vmem>>, vector<1x2x16x4xf32>
    %29 = vector.shape_cast %28 : vector<1x2x16x4xf32> to vector<2x16x4xf32>
    %30 = tpu.concatenate %27, %29 in 0 : vector<6x16x4xf32>, vector<2x16x4xf32> -> vector<8x16x4xf32>
    %c0_49 = arith.constant 0 : index
    %c2_50 = arith.constant 2 : index
    %c2_51 = arith.constant 2 : index
    %c0_52 = arith.constant 0 : index
    %31 = vector.load %arg2[%c0_49, %c2_50, %c2_51, %c0_52] : memref<1x8x18x4xf32, #tpu.memory_space<vmem>>, vector<1x6x16x4xf32>
    %32 = vector.shape_cast %31 : vector<1x6x16x4xf32> to vector<6x16x4xf32>
    %c0_53 = arith.constant 0 : index
    %c0_54 = arith.constant 0 : index
    %c2_55 = arith.constant 2 : index
    %c0_56 = arith.constant 0 : index
    %33 = vector.load %arg3[%c0_53, %c0_54, %c2_55, %c0_56] : memref<1x2x18x4xf32, #tpu.memory_space<vmem>>, vector<1x2x16x4xf32>
    %34 = vector.shape_cast %33 : vector<1x2x16x4xf32> to vector<2x16x4xf32>
    %35 = tpu.concatenate %32, %34 in 0 : vector<6x16x4xf32>, vector<2x16x4xf32> -> vector<8x16x4xf32>
    %36 = tpu.concatenate %1, %3, %5, %10, %15, %20, %25, %30, %35 in 2 : vector<8x16x4xf32>, vector<8x16x4xf32>, vector<8x16x4xf32>, vector<8x16x4xf32>, vector<8x16x4xf32>, vector<8x16x4xf32>, vector<8x16x4xf32>, vector<8x16x4xf32>, vector<8x16x4xf32> -> vector<8x16x36xf32>
    %37 = vector.shape_cast %36 : vector<8x16x36xf32> to vector<128x36xf32>
    %c0_57 = arith.constant 0 : index
    %c0_58 = arith.constant 0 : index
    %38 = vector.load %arg4[%c0_57, %c0_58] : memref<36x128xf32, #tpu.memory_space<vmem>>, vector<36x128xf32>
    %cst = arith.constant dense<0.000000e+00> : vector<128x128xf32>
    %39 = tpu.matmul %37, %38, %cst {dimension_numbers = #tpu.dot_dimension_numbers<[1], [0], [0], [1], [0, 0, 1, 1], [], []>} : vector<128x36xf32>, vector<36x128xf32>, vector<128x128xf32> -> vector<128x128xf32>
    %c0_59 = arith.constant 0 : index
    %c0_60 = arith.constant 0 : index
    %40 = vector.load %arg5[%c0_59, %c0_60] : memref<1x128xf32, #tpu.memory_space<vmem>>, vector<1x128xf32>
    %41 = vector.broadcast %40 : vector<1x128xf32> to vector<128x128xf32>
    %42 = arith.mulf %39, %41 : vector<128x128xf32>
    %c0_61 = arith.constant 0 : index
    %c0_62 = arith.constant 0 : index
    %43 = vector.load %arg6[%c0_61, %c0_62] : memref<1x128xf32, #tpu.memory_space<vmem>>, vector<1x128xf32>
    %44 = vector.broadcast %43 : vector<1x128xf32> to vector<128x128xf32>
    %45 = arith.addf %42, %44 : vector<128x128xf32>
    %cst_63 = arith.constant 0.000000e+00 : f32
    %46 = vector.broadcast %cst_63 : f32 to vector<128x128xf32>
    %47 = arith.maximumf %45, %46 : vector<128x128xf32>
    %48 = vector.shape_cast %47 : vector<128x128xf32> to vector<1x8x16x128xf32>
    %c0_64 = arith.constant 0 : index
    %c0_65 = arith.constant 0 : index
    %c0_66 = arith.constant 0 : index
    %c0_67 = arith.constant 0 : index
    %49 = vector.load %arg7[%c0_64, %c0_65, %c0_66, %c0_67] : memref<1x8x16x128xf32, #tpu.memory_space<vmem>>, vector<1x8x16x128xf32>
    tpu.vector_store %arg7[%c0_64, %c0_65, %c0_66, %c0_67], %48 {strides = array<i32>} : memref<1x8x16x128xf32, #tpu.memory_space<vmem>>, vector<1x8x16x128xf32>,
    return
  }
  func.func @transform_0(%arg0: i32, %arg1: i32) -> (i32, i32, i32, i32) {
    %c0_i32 = arith.constant 0 : i32
    %c0_i32_0 = arith.constant 0 : i32
    %c0_i32_1 = arith.constant 0 : i32
    return %arg0, %arg1, %c0_i32, %c0_i32_0 : i32, i32, i32, i32
  }
  func.func @transform_1(%arg0: i32, %arg1: i32) -> (i32, i32, i32, i32) {
    %c1_i32 = arith.constant 1 : i32
    %0 = arith.addi %arg1, %c1_i32 : i32
    %c4_i32 = arith.constant 4 : i32
    %1 = arith.muli %0, %c4_i32 : i32
    %c0_i32 = arith.constant 0 : i32
    %c0_i32_0 = arith.constant 0 : i32
    %c0_i32_1 = arith.constant 0 : i32
    return %arg0, %1, %c0_i32, %c0_i32_0 : i32, i32, i32, i32
  }
  func.func @transform_2(%arg0: i32, %arg1: i32) -> (i32, i32) {
    %c0_i32 = arith.constant 0 : i32
    %c0_i32_0 = arith.constant 0 : i32
    %c0_i32_1 = arith.constant 0 : i32
    return %c0_i32, %c0_i32_0 : i32, i32
  }
  func.func @transform_3(%arg0: i32, %arg1: i32) -> (i32, i32) {
    %c0_i32 = arith.constant 0 : i32
    %c0_i32_0 = arith.constant 0 : i32
    %c0_i32_1 = arith.constant 0 : i32
    return %c0_i32, %c0_i32_0 : i32, i32
  }
  func.func @transform_4(%arg0: i32, %arg1: i32) -> (i32, i32) {
    %c0_i32 = arith.constant 0 : i32
    %c0_i32_0 = arith.constant 0 : i32
    %c0_i32_1 = arith.constant 0 : i32
    return %c0_i32, %c0_i32_0 : i32, i32
  }
  func.func @transform_5(%arg0: i32, %arg1: i32) -> (i32, i32, i32, i32) {
    %c0_i32 = arith.constant 0 : i32
    %c0_i32_0 = arith.constant 0 : i32
    %c0_i32_1 = arith.constant 0 : i32
    return %arg0, %arg1, %c0_i32, %c0_i32_0 : i32, i32, i32, i32
  }
}

</mosaic_0001>

<bundles_post_ra>
// kernel: tpu_custom_call.1
= control target key start
LH: loop header
LB: loop body
LE: loop exit
PB: predicated region body
PF: predicated region fallthrough
CT: control target
= control target key end

     0   :  { %10 = vsyncpa [#allocation3], 0  ;;  %s2734_s0 = inlined_call_operand.vmem [shape: f32[2,18,18,4], index: 0, kind: input, shape index: {}]   ;;  %s2735_s1 = inlined_call_operand.vmem [shape: f32[2,18,18,4], index: 1, kind: input, shape index: {}]   ;;  %s2736_s2 = inlined_call_operand.vmem [shape: f32[36,128], index: 2, kind: input, shape index: {}]   ;;  %s2737_s3 = inlined_call_operand.vmem [shape: f32[1,128], index: 3, kind: input, shape index: {}]   ;;  %s2738_s4 = inlined_call_operand.vmem [shape: f32[1,128], index: 4, kind: input, shape index: {}]   ;;  %s2739_s5 = inlined_call_operand.hbm [shape: f32[2,16,16,128], index: 5, kind: output, shape index: {}]  }
   0x1   :  { %12 = vsyncpa [#allocation3 + $0x1], 0  ;;  %s1936_s18 = smov 0   ;;  %s1938_s19 = smov 0  }
   0x2   :  { %s1940_s20 = smov 0   ;;  %s1942_s21 = smov 0  }
   0x3   :  { %s1944_s22 = smov 0   ;;  %s1946_s23 = smov 0  }
   0x4   :  { %s1948_s24 = smov 0   ;;  %s1950_s25 = smov 0  }
   0x5 LB: > { %s1521_s26 = sadd.s32 4294967295, %s1894_s25   ;;  %s1522_s27 = sadd.s32 4294967294, %s1894_s25   ;;  %s1894_s25 = sphi %s1950_s25, %s18_s25   ;;  %s1890_s24 = sphi %s1948_s24, %s2781_s24   ;;  %s1886_s23 = sphi %s1946_s23, %s2780_s23   ;;  %s1882_s22 = sphi %s1944_s22, %s2779_s22   ;;  %s1878_s21 = sphi %s1942_s21, %s2778_s21   ;;  %s1874_s20 = sphi %s1940_s20, %s2777_s20   ;;  %s1870_s19 = sphi %s1938_s19, %s2776_s19   ;;  %s1866_s18 = sphi %s1936_s18, %s2775_s18  }
   0x6   : > { %s27_s28 = sadd.s32 1, %s1886_s23  ;;  %s30_s29 = sadd.s32 1, %s1890_s24 }
   0x7   : > { %p28_p0 = scmp.ge.s32.totalorder %s27_s28, 2  ;;  %p172_p1 = scmp.ne.s32.totalorder %s1874_s20, %s1870_s19 }
   0x8   : > { %p173_p2 = scmp.eq.s32.totalorder %s1521_s26, 3  ;;  %p178_p5 = scmp.ne.s32.totalorder %s1870_s19, %s1866_s18 }
   0x9   : > { %s2783_s28 = smov (%p28_p0, %s27_s28), 0  ;;  %s2785_s29 = smov (!%p28_p0, %s30_s29), %s1890_s24 }
   0xa   : > { %s158_s30 = ssub.s32 %s1886_s23, %s2783_s28  ;;  %p1987_p3 = por %p173_p2, %p172_p1 }
   0xb   : > { %p32_p4 = scmp.ge.s32.totalorder %s2785_s29, 2  ;;  %p179_p6 = scmp.eq.s32.totalorder %s1522_s27, 3 }
   0xc   : > { %p1527_p7 = scmp.ge.s32.totalorder %s1894_s25, 1  ;;  %p248_p9 = scmp.lt.s32.totalorder %s1894_s25, 5 }
   0xd   : > { %s2787_s29 = smov (%p32_p4, %s2785_s29), 0  ;;  %p1996_p8 = por %p179_p6, %p178_p5 }
   0xe   : > { %s157_s8 = ssub.s32 %s1890_s24, %s2787_s29  ;;  %s162_s9 = sadd.s32 1, %s1874_s20 }
   0xf   : > { %s159_s10 = sor.u32 %s158_s30, %s157_s8  ;;  %p249_p10 = pnand %p1527_p7, %p248_p9 }
  0x10   : > { %p160_p11 = scmp.eq.s32.totalorder %s159_s10, 0 }
  0x11   : > { %252 = sbr.rel (%p249_p10) target bundleno = 637 (0x27d), region = 40 }
  0x12   : > { %s2005_s11 = scalar_select %p160_p11, %s1874_s20, %s162_s9  }
  0x18   : > { %s2008_s12 = sshll.u32 %s1878_s21, 3  ;;  %p304_p12 = scmp.lt.s32.totalorder %s1882_s22, 1  ;;  %v1117_v26 = vld [vmem:[%s2736_s2] sm:$0xff]  ;;  %v1118_v27 = vld [vmem:[%s2736_s2 + $0x8] sm:$0xff]  ;;  %v1119_v31 = vld [vmem:[%s2736_s2 + $0x10] sm:$0xff]  ;;  %vm1171_vm0 = vcmask 1043456  }
  0x19   : > { %p306_p13 = scmp.lt.s32.totalorder %s2008_s12, 17  ;;  %s1896_s9 = smov 4   ;;  %v1703_v30 = vpack.c.bf16 %v1118_v27, %v1117_v26  ;;  %v1120_v32 = vld [vmem:[%s2736_s2 + $0x18] sm:$0xff]  ;;  %v1121_v36 = vld [vmem:[%s2736_s2 + $0x20] sm:$0xf]  ;;  %vm981_vm1 = vcmask 31744  }
  0x1a   : > { %s2013_s13 = scalar_select %p304_p12, %s1882_s22, 1  ;;  %v1707_v35 = vpack.c.bf16 %v1120_v32, %v1119_v31  ;;  %vm998_vm2 = vcmask 64512   ;;  %vm1015_vm3 = vcmask 97280   ;;  %vm1032_vm4 = vcmask 130048  }
  0x1b   : > { %s307_s14 = scalar_select %p306_p13, %s2008_s12, 17  ;;  %1704 = vmatprep.subr.bf16.mxu0 %v1703_v30  ;;  %1711 = vmatprep.subr.bf16.mxu1 %v1703_v30  ;;  %vm1049_vm5 = vcmask 162816   ;;  %vm1066_vm6 = vcmask 195584   ;;  %vm1083_vm7 = vcmask 228352   ;;  %vm1100_vm8 = vcmask 261120  }
  0x1c   : > { %s1718_s15 = smul.u32 54, %s2013_s13  ;;  %s2744_s10 = smov 8   ;;  %1706 = vmatpush3.bf16.msra.mxu0 %v1703_v30  ;;  %1714 = vmatpush3.bf16.msra.mxu1 %v1703_v30  ;;  %vm1122_vm9 = vcmask 293888  }
  0x1d   : > { %s1717_s16 = smul.u32 3, %s307_s14  ;;  %s2742_s14 = smov 12   ;;  %1708 = vmatprep.subr.bf16.mxu0 %v1707_v35  ;;  %1712 = vmatprep.subr.bf16.mxu1 %v1707_v35 }
  0x1e   : > { %s2740_s30 = smov 24   ;;  %s1902_s13 = smov 28  }
  0x1f   : > { %s310_s17 = sadd.s32 %s1718_s15, %s1717_s16  ;;  %s2750_s16 = smov 16  }
  0x20   : > { %s1530_s26 = sshll.u32 %s310_s17, 3  ;;  %s2746_s17 = smov 20   ;;  %1710 = vmatpush3.bf16.msra.mxu0 %v1707_v35  ;;  %1715 = vmatpush3.bf16.msra.mxu1 %v1707_v35 }
  0x21   : > { %s2022_s8 = scalar_lea.vmem %s2734_s0, %s1530_s26  ;;  %s1647_s26 = sadd.s32 8, %s2008_s12  ;;  %1677 = vmatprep.subr.msk.mxu0 %vm1171_vm0, %v1121_v36  ;;  %1713 = vmatprep.subr.msk.mxu1 %vm1171_vm0, %v1121_v36 }
  0x22   : > { %v352_v0 = vld [vmem:[%s2022_s8 + $0x9] sm:$0xff]  ;;  %v351_v1 = vld [vmem:[%s2022_s8 + $0x1] sm:$0xff]  ;;  %v2053_v8 = vld [vmem:[%s2022_s8 + $0x78] sm:$0xff]  ;;  %p324_p0 = scmp.lt.s32.totalorder %s1647_s26, 17 }
  0x23   : > { %493 = vrot.lane.b32.xlu1 %v352_v0, %s1896_s9  ;;  %491 = vrot.lane.b32.xlu0 %v351_v1, %s1896_s9  ;;  %v2029_v2 = vld [vmem:[%s2022_s8 + $0x69] sm:$0xff]  ;;  %v2032_v3 = vld [vmem:[%s2022_s8 + $0x61] sm:$0xff] }
  0x24   : > { %v2039_v4 = vld [vmem:[%s2022_s8 + $0x62] sm:$0xff]  ;;  %v2046_v6 = vld [vmem:[%s2022_s8 + $0x6a] sm:$0xff]  ;;  %v2056_v9 = vld [vmem:[%s2022_s8 + $0x18] sm:$0xff]  ;;  %s2789_s26 = smov (!%p324_p0, %s1647_s26), 17  ;;  %1678 = vmatpush3.msk.msra.mxu0 %vm1171_vm0, %v1121_v36  ;;  %1716 = vmatpush3.msk.msra.mxu1 %vm1171_vm0, %v1121_v36 }
  0x25   : > { %v367_v5 = vld [vmem:[%s2022_s8 + $0x2] sm:$0xff]  ;;  %v368_v7 = vld [vmem:[%s2022_s8 + $0xa] sm:$0xff]  ;;  %v2073_v12 = vld [vmem:[%s2022_s8 + $0x79] sm:$0xff]  ;;  %s1719_s27 = smul.u32 3, %s2789_s26 }
  0x26   : > { %v2063_v10 = vld [vmem:[%s2022_s8 + $0x80] sm:$0xff]  ;;  %v2115_v20 = vld [vmem:[%s2022_s8 + $0x90] sm:$0xff]  ;;  %v2132_v22 = vld [vmem:[%s2022_s8 + $0x98] sm:$0xff] }
  0x27   : > { %509 = vrot.lane.b32.xlu1 %v2029_v2, %s1896_s9  ;;  %507 = vrot.lane.b32.xlu0 %v2032_v3, %s1896_s9  ;;  %v2066_v11 = vld [vmem:[%s2022_s8 + $0x20] sm:$0xff]  ;;  %s2112_s12 = sadd.s32 %s1719_s27, %s1718_s15  ;;  %v2118_v21 = vld [vmem:[%s2022_s8 + $0x30] sm:$0xff]  ;;  %s2764_s27 = smov 24  }
  0x28   : > { %v1548_v13 = vld [vmem:[%s2022_s8 + $0x19] sm:$0xff]  ;;  %v2083_v14 = vld [vmem:[%s2022_s8 + $0x81] sm:$0xff]  ;;  %v1596_v24 = vld [vmem:[%s2022_s8 + $0x91] sm:$0xff]  ;;  %s2765_s15 = smov 12   ;;  %s1533_s26 = sshll.u32 %s2112_s12, 3 }
  0x29   : > { %v1549_v15 = vld [vmem:[%s2022_s8 + $0x21] sm:$0xff]  ;;  %v2135_v23 = vld [vmem:[%s2022_s8 + $0x38] sm:$0xff]  ;;  %v2219_v47 = vld [vmem:[%s2022_s8 + $0xb0] sm:$0xff] }
  0x2a   : > { %v2090_v16 = vld [vmem:[%s2022_s8 + $0x7a] sm:$0xff]  ;;  %v2104_v18 = vld [vmem:[%s2022_s8 + $0x82] sm:$0xff]  ;;  %v1588_v25 = vld [vmem:[%s2022_s8 + $0x31] sm:$0xff]  ;;  %2766 = vst [vmem:[#allocation8_spill] sm:$0xff] %v2219_v47 }
  0x2b   : > { %571 = vrot.lane.b32.xlu1 %v2039_v4, %s2744_s10  ;;  %555 = vrot.lane.b32.xlu0 %v367_v5, %s2744_s10  ;;  %v1562_v17 = vld [vmem:[%s2022_s8 + $0x1a] sm:$0xff]  ;;  %2759 = vst [vmem:[#allocation5_spill] sm:$0xff] %v2104_v18  ;;  %v1563_v19 = vld [vmem:[%s2022_s8 + $0x22] sm:$0xff] }
  0x2c   : > { %v1597_v28 = vld [vmem:[%s2022_s8 + $0x99] sm:$0xff]  ;;  %v2191_v39 = vld [vmem:[%s2022_s8 + $0xa8] sm:$0xff]  ;;  %v2222_v48 = vld [vmem:[%s2022_s8 + $0x50] sm:$0xff] }
  0x2d   : > { %v1589_v29 = vld [vmem:[%s2022_s8 + $0x39] sm:$0xff]  ;;  %2762 = vst [vmem:[#allocation6_spill] sm:$0xff] %v2191_v39  ;;  %v2194_v40 = vld [vmem:[%s2022_s8 + $0x48] sm:$0xff]  ;;  %2767 = vst [vmem:[#allocation9_spill] sm:$0xff] %v2222_v48 }
  0x2e   : > { %v1608_v33 = vld [vmem:[%s2022_s8 + $0x92] sm:$0xff]  ;;  %v1609_v37 = vld [vmem:[%s2022_s8 + $0x9a] sm:$0xff]  ;;  %2763 = vst [vmem:[#allocation7_spill] sm:$0xff] %v2194_v40  ;;  %v1598_v51 = vld [vmem:[%s2022_s8 + $0xa9] sm:$0xff] }
  0x2f   : > { %573 = vrot.lane.b32.xlu1 %v2046_v6, %s2744_s10  ;;  %557 = vrot.lane.b32.xlu0 %v368_v7, %s2744_s10  ;;  %v1600_v34 = vld [vmem:[%s2022_s8 + $0x32] sm:$0xff]  ;;  %v1601_v38 = vld [vmem:[%s2022_s8 + $0x3a] sm:$0xff] }
  0x30   : > { %v1590_v52 = vld [vmem:[%s2022_s8 + $0x49] sm:$0xff]  ;;  %v1599_v59 = vld [vmem:[%s2022_s8 + $0xb1] sm:$0xff] }
  0x31   : > { %v1591_v60 = vld [vmem:[%s2022_s8 + $0x51] sm:$0xff] }
  0x32   : > { %v1610_v63 = vld [vmem:[%s2022_s8 + $0xaa] sm:$0xff]  ;;  %v1603_v26 = vld [vmem:[%s2022_s8 + $0x52] sm:$0xff] }
  0x33   : > { %635 = vrot.lane.b32.xlu1 %v2053_v8, %s2742_s14  ;;  %619 = vrot.lane.b32.xlu0 %v2056_v9, %s2742_s14  ;;  %v1602_v0 = vld [vmem:[%s2022_s8 + $0x4a] sm:$0xff] }
  0x37   : > { %637 = vrot.lane.b32.xlu1 %v2063_v10, %s2742_s14  ;;  %621 = vrot.lane.b32.xlu0 %v2066_v11, %s2742_s14 }
  0x3b   : > { %699 = vrot.lane.b32.xlu1 %v2073_v12, %s2750_s16  ;;  %683 = vrot.lane.b32.xlu0 %v1548_v13, %s2750_s16 }
  0x3f   : > { %511 = vrot.lane.b32.xlu1 %v2073_v12, %s1896_s9  ;;  %495 = vrot.lane.b32.xlu0 %v1548_v13, %s1896_s9 }
  0x43   : > { %701 = vrot.lane.b32.xlu1 %v2083_v14, %s2750_s16  ;;  %685 = vrot.lane.b32.xlu0 %v1549_v15, %s2750_s16 }
  0x47   : > { %763 = vrot.lane.b32.xlu1 %v2090_v16, %s2746_s17  ;;  %747 = vrot.lane.b32.xlu0 %v1562_v17, %s2746_s17 }
  0x4b   : > { %513 = vrot.lane.b32.xlu1 %v2083_v14, %s1896_s9  ;;  %497 = vrot.lane.b32.xlu0 %v1549_v15, %s1896_s9 }
  0x4f   : > { %575 = vrot.lane.b32.xlu1 %v2090_v16, %s2744_s10  ;;  %559 = vrot.lane.b32.xlu0 %v1562_v17, %s2744_s10 }
  0x53   : > { %765 = vrot.lane.b32.xlu1 %v2104_v18, %s2746_s17  ;;  %749 = vrot.lane.b32.xlu0 %v1563_v19, %s2746_s17  ;;  %s2761_s17 = smov 8  }
  0x57   : > { %825 = vrot.lane.b32.xlu1 %v2115_v20, %s2740_s30  ;;  %809 = vrot.lane.b32.xlu0 %v2118_v21, %s2740_s30 }
  0x5b   : > { %577 = vrot.lane.b32.xlu1 %v2104_v18, %s2744_s10  ;;  %561 = vrot.lane.b32.xlu0 %v1563_v19, %s2744_s10  ;;  %s1634_s10 = sshll.u32 %s1882_s22, 5 }
  0x5f   : > { %639 = vrot.lane.b32.xlu1 %v2115_v20, %s2742_s14  ;;  %623 = vrot.lane.b32.xlu0 %v2118_v21, %s2742_s14 }
  0x63   : > { %827 = vrot.lane.b32.xlu1 %v2132_v22, %s2740_s30  ;;  %811 = vrot.lane.b32.xlu0 %v2135_v23, %s2740_s30  ;;  %s2748_s30 = smov 32  }
  0x67   : > { %887 = vrot.lane.b32.xlu1 %v1596_v24, %s1902_s13  ;;  %871 = vrot.lane.b32.xlu0 %v1588_v25, %s1902_s13 }
  0x6b   : > { %641 = vrot.lane.b32.xlu1 %v2132_v22, %s2742_s14  ;;  %625 = vrot.lane.b32.xlu0 %v2135_v23, %s2742_s14  ;;  %s2760_s14 = smov 20  }
  0x6f   : > { %703 = vrot.lane.b32.xlu1 %v1596_v24, %s2750_s16  ;;  %687 = vrot.lane.b32.xlu0 %v1588_v25, %s2750_s16 }
  0x73   : > { %889 = vrot.lane.b32.xlu1 %v1597_v28, %s1902_s13  ;;  %873 = vrot.lane.b32.xlu0 %v1589_v29, %s1902_s13 }
  0x77   : > { %949 = vrot.lane.b32.xlu1 %v1608_v33, %s2748_s30  ;;  %933 = vrot.lane.b32.xlu0 %v1600_v34, %s2748_s30 }
  0x7b   : > { %515 = vrot.lane.b32.xlu1 %v1596_v24, %s1896_s9  ;;  %499 = vrot.lane.b32.xlu0 %v1588_v25, %s1896_s9  ;;  %v1611_v25 = vld [vmem:[%s2022_s8 + $0xb2] sm:$0xff] }
  0x7f   : > { %705 = vrot.lane.b32.xlu1 %v1597_v28, %s2750_s16  ;;  %689 = vrot.lane.b32.xlu0 %v1589_v29, %s2750_s16 }
  0x83   : > { %767 = vrot.lane.b32.xlu1 %v1608_v33, %s2760_s14  ;;  %751 = vrot.lane.b32.xlu0 %v1600_v34, %s2760_s14 }
  0x87   : > { %951 = vrot.lane.b32.xlu1 %v1609_v37, %s2748_s30  ;;  %935 = vrot.lane.b32.xlu0 %v1601_v38, %s2748_s30 }
  0x8b   : > { %517 = vrot.lane.b32.xlu1 %v1597_v28, %s1896_s9  ;;  %501 = vrot.lane.b32.xlu0 %v1589_v29, %s1896_s9 }
  0x8f   : > { %579 = vrot.lane.b32.xlu1 %v1608_v33, %s2761_s17  ;;  %563 = vrot.lane.b32.xlu0 %v1600_v34, %s2761_s17 }
  0x93   : > { %769 = vrot.lane.b32.xlu1 %v1609_v37, %s2760_s14  ;;  %753 = vrot.lane.b32.xlu0 %v1601_v38, %s2760_s14 }
  0x95   : > { %v2196_v41 = vpop.permute.xlu1 %493  ;;  %v2198_v42 = vpop.permute.xlu0 %491 }
  0x97   : > { %829 = vrot.lane.b32.xlu1 %v2191_v39, %s2764_s27  ;;  %813 = vrot.lane.b32.xlu0 %v2194_v40, %s2764_s27 }
  0x99   : > { %v2204_v43 = vpop.permute.xlu1 %509  ;;  %v2206_v44 = vpop.permute.xlu0 %507 }
  0x9b   : > { %581 = vrot.lane.b32.xlu1 %v1609_v37, %s2761_s17  ;;  %565 = vrot.lane.b32.xlu0 %v1601_v38, %s2761_s17  ;;  %v343_v38 = vld [vmem:[%s2022_s8 + $0x60] sm:$0xff] }
  0x9d   : > { %v2210_v45 = vpop.permute.xlu1 %571  ;;  %v2212_v46 = vpop.permute.xlu0 %555 }
  0x9f   : > { %643 = vrot.lane.b32.xlu1 %v2191_v39, %s2765_s15  ;;  %627 = vrot.lane.b32.xlu0 %v2194_v40, %s2765_s15 }
  0xa1   : > { %v2224_v49 = vpop.permute.xlu1 %573  ;;  %v2226_v50 = vpop.permute.xlu0 %557 }
  0xa3   : > { %831 = vrot.lane.b32.xlu1 %v2219_v47, %s2764_s27  ;;  %815 = vrot.lane.b32.xlu0 %v2222_v48, %s2764_s27 }
  0xa5   : > { %v2234_v53 = vpop.permute.xlu1 %635  ;;  %v2236_v54 = vpop.permute.xlu0 %619 }
  0xa7   : > { %891 = vrot.lane.b32.xlu1 %v1598_v51, %s1902_s13  ;;  %875 = vrot.lane.b32.xlu0 %v1590_v52, %s1902_s13 }
  0xa9   : > { %v2240_v55 = vpop.permute.xlu1 %637  ;;  %v2242_v56 = vpop.permute.xlu0 %621 }
  0xab   : > { %645 = vrot.lane.b32.xlu1 %v2219_v47, %s2765_s15  ;;  %629 = vrot.lane.b32.xlu0 %v2222_v48, %s2765_s15 }
  0xad   : > { %v2248_v57 = vpop.permute.xlu1 %699  ;;  %v2250_v58 = vpop.permute.xlu0 %683 }
  0xaf   : > { %707 = vrot.lane.b32.xlu1 %v1598_v51, %s2750_s16  ;;  %691 = vrot.lane.b32.xlu0 %v1590_v52, %s2750_s16 }
  0xb1   : > { %v512_v61 = vpop.permute.xlu1 %511  ;;  %v496_v62 = vpop.permute.xlu0 %495 }
  0xb3   : > { %893 = vrot.lane.b32.xlu1 %v1599_v59, %s1902_s13  ;;  %877 = vrot.lane.b32.xlu0 %v1591_v60, %s1902_s13 }
  0xb5   : > { %v2260_v1 = vpop.permute.xlu1 %701  ;;  %v2262_v5 = vpop.permute.xlu0 %685 }
  0xb7   : > { %953 = vrot.lane.b32.xlu1 %v1610_v63, %s2748_s30  ;;  %937 = vrot.lane.b32.xlu0 %v1602_v0, %s2748_s30 }
  0xb9   : > { %v2266_v7 = vpop.permute.xlu1 %763  ;;  %v2268_v13 = vpop.permute.xlu0 %747 }
  0xbb   : > { %519 = vrot.lane.b32.xlu1 %v1598_v51, %s1896_s9  ;;  %503 = vrot.lane.b32.xlu0 %v1590_v52, %s1896_s9 }
  0xbd   : > { %v2272_v15 = vpop.permute.xlu1 %513  ;;  %v2274_v17 = vpop.permute.xlu0 %497 }
  0xbf   : > { %709 = vrot.lane.b32.xlu1 %v1599_v59, %s2750_s16  ;;  %693 = vrot.lane.b32.xlu0 %v1591_v60, %s2750_s16  ;;  %s2304_s16 = scalar_lea.vmem %s2735_s1, %s1533_s26  ;;  %s1645_s26 = sshll.u32 %s1878_s21, 4 }
  0xc0   : > { %v398_v35 = vld [vmem:[%s2304_s16] sm:$0xff]  ;;  %v399_v47 = vld [vmem:[%s2304_s16 + $0x8] sm:$0xff] }
  0xc1   : > { %v576_v19 = vpop.permute.xlu1 %575  ;;  %v560_v24 = vpop.permute.xlu0 %559 }
  0xc3   : > { %771 = vrot.lane.b32.xlu1 %v1610_v63, %s2760_s14  ;;  %755 = vrot.lane.b32.xlu0 %v1602_v0, %s2760_s14 }
  0xc5   : > { %v2282_v27 = vpop.permute.xlu1 %765  ;;  %v2284_v28 = vpop.permute.xlu0 %749 }
  0xc7   : > { %955 = vrot.lane.b32.xlu1 %v1611_v25, %s2748_s30  ;;  %939 = vrot.lane.b32.xlu0 %v1603_v26, %s2748_s30 }
  0xc9   : > { %v2288_v29 = vpop.permute.xlu1 %825  ;;  %v2290_v30 = vpop.permute.xlu0 %809 }
  0xcb   : > { %521 = vrot.lane.b32.xlu1 %v1599_v59, %s1896_s9  ;;  %505 = vrot.lane.b32.xlu0 %v1591_v60, %s1896_s9  ;;  %s2768_s9 = smov 16  }
  0xcd   : > { %v2294_v31 = vpop.permute.xlu1 %577  ;;  %v2296_v32 = vpop.permute.xlu0 %561 }
  0xcf   : > { %583 = vrot.lane.b32.xlu1 %v1610_v63, %s2761_s17  ;;  %567 = vrot.lane.b32.xlu0 %v1602_v0, %s2761_s17  ;;  %v992_v63 = vsel %vm981_vm1, %v2053_v8, %v512_v61  ;;  %v984_v0 = vsel %vm981_vm1, %v2056_v9, %v496_v62  ;;  %v344_v9 = vld [vmem:[%s2022_s8 + $0x68] sm:$0xff] }
  0xd0   : > { %v1001_v48 = vsel %vm998_vm2, %v984_v0, %v560_v24  ;;  %v990_v24 = vsel %vm981_vm1, %v343_v38, %v2206_v44 }
  0xd1   : > { %v640_v33 = vpop.permute.xlu1 %639  ;;  %v624_v34 = vpop.permute.xlu0 %623 }
  0xd2   : > { %v1018_v61 = vsel %vm1015_vm3, %v1001_v48, %v624_v34  ;;  %v1007_v48 = vsel %vm998_vm2, %v990_v24, %v2210_v45 }
  0xd3   : > { %773 = vrot.lane.b32.xlu1 %v1611_v25, %s2760_s14  ;;  %757 = vrot.lane.b32.xlu0 %v1603_v26, %s2760_s14 }
  0xd5   : > { %v2309_v36 = vpop.permute.xlu1 %827  ;;  %v2311_v37 = vpop.permute.xlu0 %811 }
  0xd7   : > { %833 = vrot.lane.b32.xlu1 %v398_v35, %s2764_s27  ;;  %817 = vrot.lane.b32.xlu0 %v343_v38, %s2764_s27 }
  0xd9   : > { %v888_v51 = vpop.permute.xlu1 %887  ;;  %v872_v52 = vpop.permute.xlu0 %871 }
  0xdb   : > { %585 = vrot.lane.b32.xlu1 %v1611_v25, %s2761_s17  ;;  %569 = vrot.lane.b32.xlu0 %v1603_v26, %s2761_s17  ;;  %v335_v25 = vld [vmem:[%s2022_s8] sm:$0xff]  ;;  %v1009_v26 = vsel %vm998_vm2, %v992_v63, %v576_v19 }
  0xdc   : > { %v1026_v40 = vsel %vm1015_vm3, %v1009_v26, %v640_v33  ;;  %v982_v19 = vsel %vm981_vm1, %v335_v25, %v2198_v42 }
  0xdd   : > { %v2318_v59 = vpop.permute.xlu1 %641  ;;  %v2320_v60 = vpop.permute.xlu0 %625 }
  0xdf   : > { %647 = vrot.lane.b32.xlu1 %v398_v35, %s2765_s15  ;;  %631 = vrot.lane.b32.xlu0 %v343_v38, %s2765_s15 }
  0xe1   : > { %v704_v39 = vpop.permute.xlu1 %703  ;;  %v688_v18 = vpop.permute.xlu0 %687 }
  0xe2   : > { %v2336_v62 = vsel %vm1032_vm4, %v1026_v40, %v704_v39  ;;  %v2339_v35 = vsel %vm1032_vm4, %v1018_v61, %v688_v18  ;;  %v999_v39 = vsel %vm998_vm2, %v982_v19, %v2212_v46  ;;  %v414_v40 = vld [vmem:[%s2304_s16 + $0x1] sm:$0xff]  ;;  %v1024_v18 = vsel %vm1015_vm3, %v1007_v48, %v2234_v53  ;;  %v415_v61 = vld [vmem:[%s2304_s16 + $0x9] sm:$0xff] }
  0xe3   : > { %835 = vrot.lane.b32.xlu1 %v399_v47, %s2764_s27  ;;  %819 = vrot.lane.b32.xlu0 %v344_v9, %s2764_s27  ;;  %v1016_v42 = vsel %vm1015_vm3, %v999_v39, %v2236_v54  ;;  %v1041_v34 = vsel %vm1032_vm4, %v1024_v18, %v2248_v57  ;;  %v430_v48 = vld [vmem:[%s2304_s16 + $0x2] sm:$0xff] }
  0xe4   : > { %v1033_v45 = vsel %vm1032_vm4, %v1016_v42, %v2250_v58  ;;  %v1058_v46 = vsel %vm1049_vm5, %v1041_v34, %v2266_v7 }
  0xe5   : > { %v890_v44 = vpop.permute.xlu1 %889  ;;  %v874_v33 = vpop.permute.xlu0 %873  ;;  %v1050_v38 = vsel %vm1049_vm5, %v1033_v45, %v2268_v13  ;;  %v1075_v53 = vsel %vm1066_vm6, %v1058_v46, %v2288_v29 }
  0xe6   : > { %v1067_v54 = vsel %vm1066_vm6, %v1050_v38, %v2290_v30  ;;  %v1092_v57 = vsel %vm1083_vm7, %v1075_v53, %v888_v51  ;;  %v993_v51 = vsel %vm981_vm1, %v2063_v10, %v2272_v15 }
  0xe7   : > { %895 = vrot.lane.b32.xlu1 %v414_v40, %s1902_s13  ;;  %879 = vrot.lane.b32.xlu0 %v2032_v3, %s1902_s13  ;;  %v1084_v58 = vsel %vm1083_vm7, %v1067_v54, %v872_v52  ;;  %v985_v52 = vsel %vm981_vm1, %v2066_v11, %v2274_v17  ;;  %v1010_v25 = vsel %vm998_vm2, %v993_v51, %v2294_v31 }
  0xe8   : > { %v1002_v26 = vsel %vm998_vm2, %v985_v52, %v2296_v32  ;;  %v1027_v15 = vsel %vm1015_vm3, %v1010_v25, %v2318_v59  ;;  %v991_v32 = vsel %vm981_vm1, %v344_v9, %v2204_v43  ;;  %v460_v52 = vld [vmem:[%s2304_s16 + $0x21] sm:$0xff] }
  0xe9   : > { %v950_v7 = vpop.permute.xlu1 %949  ;;  %v934_v63 = vpop.permute.xlu0 %933  ;;  %v1019_v11 = vsel %vm1015_vm3, %v1002_v26, %v2320_v60  ;;  %v1008_v59 = vsel %vm998_vm2, %v991_v32, %v2224_v49 }
  0xea   : > { %v1101_v13 = vsel %vm1100_vm8, %v1084_v58, %v934_v63  ;;  %v1109_v0 = vsel %vm1100_vm8, %v1092_v57, %v950_v7  ;;  %v1025_v39 = vsel %vm1015_vm3, %v1008_v59, %v2240_v55  ;;  %v446_v58 = vld [vmem:[%s2304_s16 + $0x20] sm:$0xff] }
  0xeb   : > { %649 = vrot.lane.b32.xlu1 %v399_v47, %s2765_s15  ;;  %633 = vrot.lane.b32.xlu0 %v344_v9, %s2765_s15  ;;  %v336_v47 = vld [vmem:[%s2022_s8 + $0x8] sm:$0xff]  ;;  %v1042_v9 = vsel %vm1032_vm4, %v1025_v39, %v2260_v1  ;;  %s2769_s8 = smov 32  }
  0xec   : > { %1679 = vmatprep.mubr.msk.f32.mxu0 %vm1122_vm9, %v1101_v13  ;;  %1691 = vmatprep.mubr.msk.f32.mxu1 %vm1122_vm9, %v1109_v0  ;;  %v983_v31 = vsel %vm981_vm1, %v336_v47, %v2196_v41 }
  0xed   : > { %v516_v29 = vpop.permute.xlu1 %515  ;;  %v500_v30 = vpop.permute.xlu0 %499  ;;  %v1000_v60 = vsel %vm998_vm2, %v983_v31, %v2226_v50  ;;  %v1059_v50 = vsel %vm1049_vm5, %v1042_v9, %v2282_v27  ;;  %v2770_v31 = vld [vmem:[#allocation5_spill] sm:$0xff] }
  0xee   : > { %v1017_v41 = vsel %vm1015_vm3, %v1000_v60, %v2242_v56  ;;  %v1076_v55 = vsel %vm1066_vm6, %v1059_v50, %v2309_v36  ;;  %v986_v45 = vsel %vm981_vm1, %v2118_v21, %v500_v30 }
  0xef   : > { %711 = vrot.lane.b32.xlu1 %v414_v40, %s2768_s9  ;;  %695 = vrot.lane.b32.xlu0 %v2032_v3, %s2768_s9  ;;  %v1034_v49 = vsel %vm1032_vm4, %v1017_v41, %v2262_v5  ;;  %v1093_v1 = vsel %vm1083_vm7, %v1076_v55, %v890_v44  ;;  %v431_v44 = vld [vmem:[%s2304_s16 + $0xa] sm:$0xff] }
  0xf0   : > { %v1051_v18 = vsel %vm1049_vm5, %v1034_v49, %v2284_v28 }
  0xf1   : > { %v706_v17 = vpop.permute.xlu1 %705  ;;  %v690_v19 = vpop.permute.xlu0 %689  ;;  %v1068_v56 = vsel %vm1066_vm6, %v1051_v18, %v2311_v37 }
  0xf2   : > { %v2399_v24 = vsel %vm1032_vm4, %v1027_v15, %v706_v17  ;;  %v2402_v3 = vsel %vm1032_vm4, %v1019_v11, %v690_v19  ;;  %v1085_v5 = vsel %vm1083_vm7, %v1068_v56, %v874_v33  ;;  %v994_v33 = vsel %vm981_vm1, %v2115_v20, %v516_v29  ;;  %v445_v20 = vld [vmem:[%s2304_s16 + $0x18] sm:$0xff]  ;;  %v474_v15 = vld [vmem:[%s2304_s16 + $0x22] sm:$0xff] }
  0xf3   : > { %897 = vrot.lane.b32.xlu1 %v415_v61, %s1902_s13  ;;  %881 = vrot.lane.b32.xlu0 %v2029_v2, %s1902_s13 }
  0xf5   : > { %v2420_v40 = vpop.permute.xlu1 %767  ;;  %v2422_v43 = vpop.permute.xlu0 %751 }
  0xf6   : > { %v1060_v39 = vsel %vm1049_vm5, %v2336_v62, %v2420_v40  ;;  %v1052_v41 = vsel %vm1049_vm5, %v2339_v35, %v2422_v43 }
  0xf7   : > { %957 = vrot.lane.b32.xlu1 %v430_v48, %s2769_s8  ;;  %941 = vrot.lane.b32.xlu0 %v2039_v4, %s2769_s8 }
  0xf9   : > { %v952_v27 = vpop.permute.xlu1 %951  ;;  %v936_v42 = vpop.permute.xlu0 %935 }
  0xfa   : > { %v1110_v28 = vsel %vm1100_vm8, %v1093_v1, %v952_v27  ;;  %v1102_v34 = vsel %vm1100_vm8, %v1085_v5, %v936_v42 }
  0xfb   : > { %713 = vrot.lane.b32.xlu1 %v415_v61, %s2768_s9  ;;  %697 = vrot.lane.b32.xlu0 %v2029_v2, %s2768_s9  ;;  %s1412_s9 = sadd.s32 %s1645_s26, %s1634_s10 }
  0xfc   : > { %1680 = vmatmul.mubr.msk.f32.vlgmr.msra.gmra.mrb[0].mxu0 %vm1122_vm9, %v1102_v34  ;;  %1692 = vmatmul.mubr.msk.f32.vlgmr.msra.gmra.mrb[0].mxu1 %vm1122_vm9, %v1110_v28 }
  0xfd   : > { %v518_v36 = vpop.permute.xlu1 %517  ;;  %v502_v37 = vpop.permute.xlu0 %501 }
  0xfe   : > { %v995_v7 = vsel %vm981_vm1, %v2132_v22, %v518_v36  ;;  %v987_v63 = vsel %vm981_vm1, %v2135_v23, %v502_v37 }
  0xff   : > { %775 = vrot.lane.b32.xlu1 %v430_v48, %s2760_s14  ;;  %759 = vrot.lane.b32.xlu0 %v2039_v4, %s2760_s14 }
 0x101   : > { %v580_v2 = vpop.permute.xlu1 %579  ;;  %v564_v46 = vpop.permute.xlu0 %563 }
 0x102   : > { %v1011_v38 = vsel %vm998_vm2, %v994_v33, %v580_v2  ;;  %v1003_v53 = vsel %vm998_vm2, %v986_v45, %v564_v46 }
 0x103   : > { %959 = vrot.lane.b32.xlu1 %v431_v44, %s2769_s8  ;;  %943 = vrot.lane.b32.xlu0 %v2046_v6, %s2769_s8 }
 0x105   : > { %v2461_v4 = vpop.permute.xlu1 %769  ;;  %v2463_v54 = vpop.permute.xlu0 %753 }
 0x106   : > { %v1061_v36 = vsel %vm1049_vm5, %v2399_v24, %v2461_v4  ;;  %v1053_v37 = vsel %vm1049_vm5, %v2402_v3, %v2463_v54  ;;  %v2771_v4 = vld [vmem:[#allocation6_spill] sm:$0xff] }
 0x107   : > { %777 = vrot.lane.b32.xlu1 %v431_v44, %s2760_s14  ;;  %761 = vrot.lane.b32.xlu0 %v2046_v6, %s2760_s14 }
 0x109   : > { %v830_v21 = vpop.permute.xlu1 %829  ;;  %v814_v57 = vpop.permute.xlu0 %813 }
 0x10a   : > { %v1077_v9 = vsel %vm1066_vm6, %v1060_v39, %v830_v21  ;;  %v1069_v49 = vsel %vm1066_vm6, %v1052_v41, %v814_v57  ;;  %v2772_v21 = vld [vmem:[#allocation7_spill] sm:$0xff] }
 0x10b   : > { %837 = vrot.lane.b32.xlu1 %v445_v20, %s2764_s27  ;;  %821 = vrot.lane.b32.xlu0 %v2053_v8, %s2764_s27  ;;  %v459_v8 = vld [vmem:[%s2304_s16 + $0x19] sm:$0xff] }
 0x10d   : > { %v582_v13 = vpop.permute.xlu1 %581  ;;  %v566_v0 = vpop.permute.xlu0 %565 }
 0x10e   : > { %v1012_v6 = vsel %vm998_vm2, %v995_v7, %v582_v13  ;;  %v1004_v29 = vsel %vm998_vm2, %v987_v63, %v566_v0 }
 0x10f   : > { %839 = vrot.lane.b32.xlu1 %v446_v58, %s2764_s27  ;;  %823 = vrot.lane.b32.xlu0 %v2063_v10, %s2764_s27  ;;  %v473_v10 = vld [vmem:[%s2304_s16 + $0x1a] sm:$0xff]  ;;  %s295_s16 = sand.u32 1, %s1870_s19  }
 0x110   : > { %s1528_s27 = sshll.u32 %s295_s16, 7  ;;  %s2681_s30 = scalar_lea.sflag [#allocation3], %s295_s16 }
 0x111   : > { %v644_v30 = vpop.permute.xlu1 %643  ;;  %v628_v51 = vpop.permute.xlu0 %627  ;;  %s2627_s15 = scalar_lea.vmem [#allocation2], %s1528_s27  ;;  %s1904_s27 = smov [#allocation2]  }
 0x112   : > { %v1028_v22 = vsel %vm1015_vm3, %v1011_v38, %v644_v30  ;;  %v1020_v23 = vsel %vm1015_vm3, %v1003_v53, %v628_v51  ;;  %s1415_s21 = sshll.u32 %s2627_s15, 4  ;;  %s1804_s26 = sshll.u32 %s1904_s27, 4  ;;  %s2673_s21 = int_to_ptr.vmem [resolvable:$true] %s1415_s21  ;;  %s1805_s26 = int_to_ptr.vmem [resolvable:$false] %s1804_s26 }
 0x113   : > { %899 = vrot.lane.b32.xlu1 %v459_v8, %s1902_s13  ;;  %883 = vrot.lane.b32.xlu0 %v2073_v12, %s1902_s13  ;;  %s1800_s14 = scalar_lea.vmem %s2673_s21, 2048  ;;  %s1806_s10 = scalar_lea.vmem %s1805_s26, 4096 }
 0x114   : > { %p1801_p1 = scmp.ne.s32.totalorder %s2673_s21, %s1800_s14  ;;  %p1807_p5 = scmp.lt.s32.totalorder %s2673_s21, %s1805_s26 }
 0x115   : > { %v832_v47 = vpop.permute.xlu1 %831  ;;  %v816_v25 = vpop.permute.xlu0 %815  ;;  %p1808_p6 = scmp.lt.s32.totalorder %s1806_s10, %s1800_s14 }
 0x116   : > { %v1078_v44 = vsel %vm1066_vm6, %v1061_v36, %v832_v47  ;;  %v1070_v33 = vsel %vm1066_vm6, %v1053_v37, %v816_v25  ;;  %p1802_p2 = pnand %p1801_p1, %p1987_p3 }
 0x117   : > { %901 = vrot.lane.b32.xlu1 %v460_v52, %s1902_s13  ;;  %885 = vrot.lane.b32.xlu0 %v2083_v14, %s1902_s13  ;;  %p1809_p7 = por %p1808_p6, %p1807_p5 }
 0x118   : > { %p1803_p4 = pneg %p1802_p2 }
 0x119   : > { %v892_v26 = vpop.permute.xlu1 %891  ;;  %v876_v61 = vpop.permute.xlu0 %875 }
 0x11a   : > { %v1094_v50 = vsel %vm1083_vm7, %v1077_v9, %v892_v26  ;;  %v1086_v18 = vsel %vm1083_vm7, %v1069_v49, %v876_v61  ;;  %p1810_p9 = pnand %p1809_p7, %p1803_p4 }
 0x11b   : > { %961 = vrot.lane.b32.xlu1 %v473_v10, %s2769_s8  ;;  %945 = vrot.lane.b32.xlu0 %v2090_v16, %s2769_s8 }
 0x11d   : > { %v646_v11 = vpop.permute.xlu1 %645  ;;  %v630_v17 = vpop.permute.xlu0 %629 }
 0x11e   : > { %v1029_v12 = vsel %vm1015_vm3, %v1012_v6, %v646_v11  ;;  %v1021_v19 = vsel %vm1015_vm3, %v1004_v29, %v630_v17 }
 0x11f   : > { %963 = vrot.lane.b32.xlu1 %v474_v15, %s2769_s8  ;;  %947 = vrot.lane.b32.xlu0 %v2770_v31, %s2769_s8  ;;  %s1635_s8 = sshll.u32 %s1412_s9, 7 }
 0x120   : > { %s2671_s13 = scalar_lea.hbm %s2739_s5, %s1635_s8 }
 0x121   : > { %v708_v14 = vpop.permute.xlu1 %707  ;;  %v692_v32 = vpop.permute.xlu0 %691 }
 0x122   : > { %v2503_v59 = vsel %vm1032_vm4, %v1028_v22, %v708_v14  ;;  %v2506_v60 = vsel %vm1032_vm4, %v1020_v23, %v692_v32 }
 0x125   : > { %v894_v16 = vpop.permute.xlu1 %893  ;;  %v878_v48 = vpop.permute.xlu0 %877 }
 0x126   : > { %v1095_v45 = vsel %vm1083_vm7, %v1078_v44, %v894_v16  ;;  %v1087_v2 = vsel %vm1083_vm7, %v1070_v33, %v878_v48 }
 0x129   : > { %v954_v55 = vpop.permute.xlu1 %953  ;;  %v938_v56 = vpop.permute.xlu0 %937 }
 0x12a   : > { %v1111_v1 = vsel %vm1100_vm8, %v1094_v50, %v954_v55  ;;  %v1103_v5 = vsel %vm1100_vm8, %v1086_v18, %v938_v56 }
 0x12b   : > { %1682 = vmatprep.mubr.msk.f32.mxu0 %vm1122_vm9, %v1103_v5  ;;  %1694 = vmatprep.mubr.msk.f32.mxu1 %vm1122_vm9, %v1111_v1 }
 0x12d   : > { %v520_v62 = vpop.permute.xlu1 %519  ;;  %v504_v35 = vpop.permute.xlu0 %503 }
 0x12e   : > { %v996_v54 = vsel %vm981_vm1, %v2771_v4, %v520_v62  ;;  %v988_v57 = vsel %vm981_vm1, %v2772_v21, %v504_v35  ;;  %v2773_v21 = vld [vmem:[#allocation8_spill] sm:$0xff] }
 0x131   : > { %v710_v40 = vpop.permute.xlu1 %709  ;;  %v694_v43 = vpop.permute.xlu0 %693 }
 0x132   : > { %v1046_v27 = vsel %vm1032_vm4, %v1029_v12, %v710_v40  ;;  %v1038_v42 = vsel %vm1032_vm4, %v1021_v19, %v694_v43 }
 0x135   : > { %v772_v28 = vpop.permute.xlu1 %771  ;;  %v756_v34 = vpop.permute.xlu0 %755 }
 0x136   : > { %v1062_v19 = vsel %vm1049_vm5, %v2503_v59, %v772_v28  ;;  %v1054_v31 = vsel %vm1049_vm5, %v2506_v60, %v756_v34 }
 0x139   : > { %v956_v46 = vpop.permute.xlu1 %955  ;;  %v940_v38 = vpop.permute.xlu0 %939 }
 0x13a   : > { %v1112_v53 = vsel %vm1100_vm8, %v1095_v45, %v956_v46  ;;  %v1104_v20 = vsel %vm1100_vm8, %v1087_v2, %v940_v38 }
 0x13b   : > { %1683 = vmatmul.mubr.msk.f32.gmra.mrb[2].mxu0 %vm1122_vm9, %v1104_v20  ;;  %1695 = vmatmul.mubr.msk.f32.gmra.mrb[2].mxu1 %vm1122_vm9, %v1112_v53 }
 0x13d   : > { %v2538_v24 = vpop.permute.xlu1 %521  ;;  %v2540_v3 = vpop.permute.xlu0 %505 }
 0x141   : > { %v584_v58 = vpop.permute.xlu1 %583  ;;  %v568_v7 = vpop.permute.xlu0 %567 }
 0x142   : > { %v1013_v63 = vsel %vm998_vm2, %v996_v54, %v584_v58  ;;  %v1005_v13 = vsel %vm998_vm2, %v988_v57, %v568_v7  ;;  %v997_v57 = vsel %vm981_vm1, %v2773_v21, %v2538_v24  ;;  %v2774_v58 = vld [vmem:[#allocation9_spill] sm:$0xff] }
 0x143   : > { %v989_v7 = vsel %vm981_vm1, %v2774_v58, %v2540_v3 }
 0x145   : > { %v774_v0 = vpop.permute.xlu1 %773  ;;  %v758_v6 = vpop.permute.xlu0 %757 }
 0x146   : > { %v1063_v55 = vsel %vm1049_vm5, %v1046_v27, %v774_v0  ;;  %v1055_v56 = vsel %vm1049_vm5, %v1038_v42, %v758_v6 }
 0x149   : > { %v834_v29 = vpop.permute.xlu1 %833  ;;  %v818_v8 = vpop.permute.xlu0 %817 }
 0x14a   : > { %v1079_v14 = vsel %vm1066_vm6, %v1062_v19, %v834_v29  ;;  %v1071_v32 = vsel %vm1066_vm6, %v1054_v31, %v818_v8 }
 0x14d   : > { %v586_v30 = vpop.permute.xlu1 %585  ;;  %v570_v51 = vpop.permute.xlu0 %569 }
 0x14e   : > { %v1006_v6 = vsel %vm998_vm2, %v989_v7, %v570_v51 }
 0x151   : > { %v648_v22 = vpop.permute.xlu1 %647  ;;  %v632_v23 = vpop.permute.xlu0 %631 }
 0x152   : > { %v1030_v46 = vsel %vm1015_vm3, %v1013_v63, %v648_v22  ;;  %v1022_v38 = vsel %vm1015_vm3, %v1005_v13, %v632_v23  ;;  %v1014_v13 = vsel %vm998_vm2, %v997_v57, %v586_v30 }
 0x155   : > { %v836_v52 = vpop.permute.xlu1 %835  ;;  %v820_v47 = vpop.permute.xlu0 %819 }
 0x156   : > { %v1080_v1 = vsel %vm1066_vm6, %v1063_v55, %v836_v52  ;;  %v1072_v5 = vsel %vm1066_vm6, %v1055_v56, %v820_v47 }
 0x159   : > { %v896_v25 = vpop.permute.xlu1 %895  ;;  %v880_v10 = vpop.permute.xlu0 %879 }
 0x15a   : > { %v1096_v16 = vsel %vm1083_vm7, %v1079_v14, %v896_v25  ;;  %v1088_v48 = vsel %vm1083_vm7, %v1071_v32, %v880_v10 }
 0x15d   : > { %v650_v26 = vpop.permute.xlu1 %649  ;;  %v634_v61 = vpop.permute.xlu0 %633 }
 0x15e   : > { %v1031_v22 = vsel %vm1015_vm3, %v1014_v13, %v650_v26  ;;  %v1023_v24 = vsel %vm1015_vm3, %v1006_v6, %v634_v61 }
 0x161   : > { %v712_v15 = vpop.permute.xlu1 %711  ;;  %v696_v11 = vpop.permute.xlu0 %695 }
 0x162   : > { %v1047_v4 = vsel %vm1032_vm4, %v1030_v46, %v712_v15  ;;  %v1039_v54 = vsel %vm1032_vm4, %v1022_v38, %v696_v11 }
 0x165   : > { %v898_v17 = vpop.permute.xlu1 %897  ;;  %v882_v12 = vpop.permute.xlu0 %881 }
 0x166   : > { %v1097_v62 = vsel %vm1083_vm7, %v1080_v1, %v898_v17  ;;  %v1089_v35 = vsel %vm1083_vm7, %v1072_v5, %v882_v12 }
 0x169   : > { %v958_v39 = vpop.permute.xlu1 %957  ;;  %v942_v41 = vpop.permute.xlu0 %941 }
 0x16a   : > { %v1113_v9 = vsel %vm1100_vm8, %v1096_v16, %v958_v39  ;;  %v1105_v49 = vsel %vm1100_vm8, %v1088_v48, %v942_v41  ;;  %v2610_v16 = vld [vmem:[%s2737_s3] ss:$0 sm:$0xff] }
 0x16b   : > { %1685 = vmatprep.mubr.msk.f32.mxu0 %vm1122_vm9, %v1105_v49  ;;  %1697 = vmatprep.mubr.msk.f32.mxu1 %vm1122_vm9, %v1113_v9  ;;  %v2615_v39 = vld [vmem:[%s2738_s4] ss:$0 sm:$0xff] }
 0x16d   : > { %v714_v59 = vpop.permute.xlu1 %713  ;;  %v698_v60 = vpop.permute.xlu0 %697 }
 0x16e   : > { %v1048_v25 = vsel %vm1032_vm4, %v1031_v22, %v714_v59  ;;  %v1040_v30 = vsel %vm1032_vm4, %v1023_v24, %v698_v60 }
 0x171   : > { %v776_v50 = vpop.permute.xlu1 %775  ;;  %v760_v18 = vpop.permute.xlu0 %759 }
 0x172   : > { %v1064_v0 = vsel %vm1049_vm5, %v1047_v4, %v776_v50  ;;  %v1056_v63 = vsel %vm1049_vm5, %v1039_v54, %v760_v18 }
 0x175   : > { %v960_v40 = vpop.permute.xlu1 %959  ;;  %v944_v43 = vpop.permute.xlu0 %943 }
 0x176   : > { %v1114_v28 = vsel %vm1100_vm8, %v1097_v62, %v960_v40  ;;  %v1106_v34 = vsel %vm1100_vm8, %v1089_v35, %v944_v43 }
 0x177   : > { %1686 = vmatmul.mubr.msk.f32.gmra.mrb[4].mxu0 %vm1122_vm9, %v1106_v34  ;;  %1698 = vmatmul.mubr.msk.f32.gmra.mrb[4].mxu1 %vm1122_vm9, %v1114_v28 }
 0x179   : > { %v778_v27 = vpop.permute.xlu1 %777  ;;  %v762_v42 = vpop.permute.xlu0 %761 }
 0x17a   : > { %v1065_v15 = vsel %vm1049_vm5, %v1048_v25, %v778_v27  ;;  %v1057_v26 = vsel %vm1049_vm5, %v1040_v30, %v762_v42 }
 0x17d   : > { %v838_v36 = vpop.permute.xlu1 %837  ;;  %v822_v37 = vpop.permute.xlu0 %821 }
 0x17e   : > { %v1081_v29 = vsel %vm1066_vm6, %v1064_v0, %v838_v36  ;;  %v1073_v8 = vsel %vm1066_vm6, %v1056_v63, %v822_v37 }
 0x181   : > { %v840_v44 = vpop.permute.xlu1 %839  ;;  %v824_v33 = vpop.permute.xlu0 %823 }
 0x182   : > { %v1082_v61 = vsel %vm1066_vm6, %v1065_v15, %v840_v44  ;;  %v1074_v11 = vsel %vm1066_vm6, %v1057_v26, %v824_v33 }
 0x185   : > { %v900_v45 = vpop.permute.xlu1 %899  ;;  %v884_v2 = vpop.permute.xlu0 %883 }
 0x186   : > { %v1098_v23 = vsel %vm1083_vm7, %v1081_v29, %v900_v45  ;;  %v1090_v3 = vsel %vm1083_vm7, %v1073_v8, %v884_v2 }
 0x189   : > { %v902_v53 = vpop.permute.xlu1 %901  ;;  %v886_v20 = vpop.permute.xlu0 %885 }
 0x18a   : > { %v1099_v17 = vsel %vm1083_vm7, %v1082_v61, %v902_v53  ;;  %v1091_v12 = vsel %vm1083_vm7, %v1074_v11, %v886_v20 }
 0x18d   : > { %v962_v52 = vpop.permute.xlu1 %961  ;;  %v946_v47 = vpop.permute.xlu0 %945 }
 0x18e   : > { %v1115_v51 = vsel %vm1100_vm8, %v1098_v23, %v962_v52  ;;  %v1107_v10 = vsel %vm1100_vm8, %v1090_v3, %v946_v47 }
 0x18f   : > { %1688 = vmatprep.mubr.msk.f32.mxu0 %vm1122_vm9, %v1107_v10  ;;  %1700 = vmatprep.mubr.msk.f32.mxu1 %vm1122_vm9, %v1115_v51 }
 0x191   : > { %v964_v19 = vpop.permute.xlu1 %963  ;;  %v948_v31 = vpop.permute.xlu0 %947 }
 0x192   : > { %v1116_v14 = vsel %vm1100_vm8, %v1099_v17, %v964_v19  ;;  %v1108_v32 = vsel %vm1100_vm8, %v1091_v12, %v948_v31 }
 0x193   : > { %1689 = vmatmul.mubr.msk.f32.gmra.mrb[6].mxu0 %vm1122_vm9, %v1108_v32  ;;  %1701 = vmatmul.mubr.msk.f32.gmra.mrb[6].mxu1 %vm1122_vm9, %v1116_v14 }
 0x1cf   : > { %v1681_v48 = vpop.f32.mrb[0].mxu0  ;;  %v1693_v41 = vpop.f32.mrb[0].mxu1 }
 0x1d0   : > { %v1328_v9 = vmul.f32 %v1681_v48, %v2610_v16  ;;  %v1336_v49 = vmul.f32 %v1693_v41, %v2610_v16  ;;  %v1241_v59 = vpop.f32.mrb[1].mxu0  ;;  %v1281_v60 = vpop.f32.mrb[1].mxu1 }
 0x1d1   : > { %v1327_v50 = vmul.f32 %v2610_v16, %v1241_v59  ;;  %v1335_v18 = vmul.f32 %v2610_v16, %v1281_v60 }
 0x1d2   : > { %v1351_v55 = vadd.f32 %v2615_v39, %v1328_v9  ;;  %v1359_v56 = vadd.f32 %v2615_v39, %v1336_v49 }
 0x1d3   : > { %v1350_v1 = vadd.f32 %v2615_v39, %v1327_v50  ;;  %v1358_v5 = vadd.f32 %v2615_v39, %v1335_v18 }
 0x1d4   : > { %v1367_v62 = vmax.f32 %v1351_v55, 0.0  ;;  %v1375_v35 = vmax.f32 %v1359_v56, 0.0 }
 0x1d5   : > { %v1366_v40 = vmax.f32 %v1350_v1, 0.0  ;;  %v1374_v43 = vmax.f32 %v1358_v5, 0.0 }
 0x1d6   : > { %1383 = vst [vmem:[%s2627_s15 + $0x8] sm:$0xff] %v1367_v62  ;;  %1391 = vst [vmem:[%s2627_s15 + $0x48] sm:$0xff] %v1375_v35 }
 0x1d7   : > { %1382 = vst [vmem:[%s2627_s15] sm:$0xff] %v1366_v40  ;;  %1390 = vst [vmem:[%s2627_s15 + $0x40] sm:$0xff] %v1374_v43 }
 0x20e   : > { %v1684_v28 = vpop.f32.mrb[2].mxu0  ;;  %v1696_v34 = vpop.f32.mrb[2].mxu1 }
 0x20f   : > { %v1330_v27 = vmul.f32 %v1684_v28, %v2610_v16  ;;  %v1338_v42 = vmul.f32 %v1696_v34, %v2610_v16  ;;  %v1251_v36 = vpop.f32.mrb[3].mxu0  ;;  %v1291_v37 = vpop.f32.mrb[3].mxu1 }
 0x210   : > { %v1329_v44 = vmul.f32 %v2610_v16, %v1251_v36  ;;  %v1337_v33 = vmul.f32 %v2610_v16, %v1291_v37 }
 0x211   : > { %v1353_v45 = vadd.f32 %v2615_v39, %v1330_v27  ;;  %v1361_v2 = vadd.f32 %v2615_v39, %v1338_v42 }
 0x212   : > { %v1352_v46 = vadd.f32 %v2615_v39, %v1329_v44  ;;  %v1360_v38 = vadd.f32 %v2615_v39, %v1337_v33 }
 0x213   : > { %v1369_v53 = vmax.f32 %v1353_v45, 0.0  ;;  %v1377_v20 = vmax.f32 %v1361_v2, 0.0 }
 0x214   : > { %v1368_v4 = vmax.f32 %v1352_v46, 0.0  ;;  %v1376_v54 = vmax.f32 %v1360_v38, 0.0 }
 0x215   : > { %1385 = vst [vmem:[%s2627_s15 + $0x18] sm:$0xff] %v1369_v53  ;;  %1393 = vst [vmem:[%s2627_s15 + $0x58] sm:$0xff] %v1377_v20 }
 0x216   : > { %1384 = vst [vmem:[%s2627_s15 + $0x10] sm:$0xff] %v1368_v4  ;;  %1392 = vst [vmem:[%s2627_s15 + $0x50] sm:$0xff] %v1376_v54 }
 0x24a   : > { %v1687_v21 = vpop.f32.mrb[4].mxu0  ;;  %v1699_v57 = vpop.f32.mrb[4].mxu1 }
 0x24b   : > { %v1332_v58 = vmul.f32 %v1687_v21, %v2610_v16  ;;  %v1340_v7 = vmul.f32 %v1699_v57, %v2610_v16  ;;  %v1261_v0 = vpop.f32.mrb[5].mxu0  ;;  %v1301_v63 = vpop.f32.mrb[5].mxu1 }
 0x24c   : > { %v1331_v13 = vmul.f32 %v2610_v16, %v1261_v0  ;;  %v1339_v6 = vmul.f32 %v2610_v16, %v1301_v63 }
 0x24d   : > { %v1355_v29 = vadd.f32 %v2615_v39, %v1332_v58  ;;  %v1363_v8 = vadd.f32 %v2615_v39, %v1340_v7 }
 0x24e   : > { %v1354_v22 = vadd.f32 %v2615_v39, %v1331_v13  ;;  %v1362_v24 = vadd.f32 %v2615_v39, %v1339_v6 }
 0x24f   : > { %v1371_v23 = vmax.f32 %v1355_v29, 0.0  ;;  %v1379_v3 = vmax.f32 %v1363_v8, 0.0 }
 0x250   : > { %v1370_v52 = vmax.f32 %v1354_v22, 0.0  ;;  %v1378_v47 = vmax.f32 %v1362_v24, 0.0 }
 0x251   : > { %1387 = vst [vmem:[%s2627_s15 + $0x28] sm:$0xff] %v1371_v23  ;;  %1395 = vst [vmem:[%s2627_s15 + $0x68] sm:$0xff] %v1379_v3 }
 0x252   : > { %1386 = vst [vmem:[%s2627_s15 + $0x20] sm:$0xff] %v1370_v52  ;;  %1394 = vst [vmem:[%s2627_s15 + $0x60] sm:$0xff] %v1378_v47 }
 0x266   : > { %v1690_v25 = vpop.f32.mrb[6].mxu0  ;;  %v1702_v30 = vpop.f32.mrb[6].mxu1 }
 0x267   : > { %v1334_v51 = vmul.f32 %v1690_v25, %v2610_v16  ;;  %v1342_v10 = vmul.f32 %v1702_v30, %v2610_v16  ;;  %v1271_v15 = vpop.f32.mrb[7].mxu0  ;;  %v1311_v26 = vpop.f32.mrb[7].mxu1 }
 0x268   : > { %v1333_v61 = vmul.f32 %v2610_v16, %v1271_v15  ;;  %v1341_v11 = vmul.f32 %v2610_v16, %v1311_v26 }
 0x269   : > { %v1357_v17 = vadd.f32 %v2615_v39, %v1334_v51  ;;  %v1365_v12 = vadd.f32 %v2615_v39, %v1342_v10 }
 0x26a   : > { %v1356_v19 = vadd.f32 %v2615_v39, %v1333_v61  ;;  %v1364_v31 = vadd.f32 %v2615_v39, %v1341_v11 }
 0x26b   : > { %v1373_v14 = vmax.f32 %v1357_v17, 0.0  ;;  %v1381_v32 = vmax.f32 %v1365_v12, 0.0 }
 0x26c   : > { %v1372_v16 = vmax.f32 %v1356_v19, 0.0  ;;  %v1380_v48 = vmax.f32 %v1364_v31, 0.0 }
 0x26d   : > { %1389 = vst [vmem:[%s2627_s15 + $0x38] sm:$0xff] %v1373_v14  ;;  %1397 = vst [vmem:[%s2627_s15 + $0x78] sm:$0xff] %v1381_v32 }
 0x26e   : > { %1388 = vst [vmem:[%s2627_s15 + $0x30] sm:$0xff] %v1372_v16  ;;  %1396 = vst [vmem:[%s2627_s15 + $0x70] sm:$0xff] %v1380_v48 }
 0x26f   : > { %1813 = shalt.err (!%p1810_p9)
}
 0x270   : > { %s1814_s16 = scalar_lea.hbm %s2671_s13, 2048  ;;  %s1818_s8 = scalar_lea.hbm %s2739_s5, 8192 }
 0x271   : > { %p1815_p10 = scmp.ne.s32.totalorder %s2671_s13, %s1814_s16  ;;  %p1819_p13 = scmp.lt.u32.totalorder %s2671_s13, %s2739_s5 }
 0x272   : > { %p1820_p0 = scmp.lt.u32.totalorder %s1818_s8, %s1814_s16  ;;  %p1822_p2 = scmp.lt.u32.totalorder %s1814_s16, %s2671_s13 }
 0x273   : > { %p1816_p11 = pnand %p1815_p10, %p1987_p3 }
 0x274   : > { %p1821_p1 = por %p1820_p0, %p1819_p13 }
 0x275   : > { %p1817_p12 = pneg %p1816_p11 }
 0x276   : > { %p1823_p4 = por %p1822_p2, %p1821_p1 }
 0x278   : > { %p1824_p5 = pnand %p1823_p4, %p1817_p12 }
 0x27a   : > { %1827 = shalt.err (!%p1824_p5)
}
 0x27b   : > { %s1905_s14 = smov 128  }
 0x27c   : > { %1720 = dma.vmem_to_hbm [thread:$0]  (%p1987_p3), %s2673_s21, 2048, %s2671_s13, %s2681_s30, %s1905_s14, %s1905_s14, %s2761_s17  }
 0x27d PF: > { %p1726_p6 = scmp.ge.s32.totalorder %s1894_s25, 2  ;;  %s1430_s27 = sand.u32 1, %s1866_s18  }
 0x27e   : > { %s1431_s26 = scalar_lea.sflag [#allocation3], %s1430_s27 }
 0x27f   : > { %p1723_p7 = pnand %p1726_p6, %p1996_p8 }
 0x281   : > { %1861 = dma.done.wait (!%p1723_p7), %s1431_s26, 2048  }
 0x282   : > { %1863 = vsyncadd (!%p1723_p7), %s1431_s26, 4294965248  ;;  %s18_s25 = sadd.s32 1, %s1894_s25   ;;  %s2775_s18 = smov %s1870_s19 }
 0x283   : > { %p15_p9 = scmp.ge.s32.totalorder %s18_s25, 6   ;;  %s2776_s19 = smov %s1874_s20 }
 0x284   : > { %s2777_s20 = smov %s2005_s11  ;;  %s2778_s21 = smov %s1886_s23 }
 0x285   : > { %s2779_s22 = smov %s1890_s24  ;;  %s2780_s23 = smov %s2783_s28 }
 0x286   : > { %s2781_s24 = smov %s2787_s29  ;;  %17 = sbr.rel (!%p15_p9) target bundleno = 5 (0x5), region = 80 }
 0x28d   :  { %1436 = vsyncpa [#allocation3], 1 }
 0x28e   :  { %1438 = vsyncpa [#allocation3 + $0x1], 1 }

</bundles_post_ra>
